<compile_context>
chip_gen: v7x
topology: tpu7x:2x2x1
jax: 0.10.0
libtpu: 0.0.40
codegen_flags: <defaults>
</compile_context>

<pallas_src>
import functools

import jax
import jax.numpy as jnp
from jax import lax
from jax.experimental import pallas as pl
from jax.experimental.pallas import tpu as pltpu

LANES = 128
SUBLANES = 8
MAX_TILE_ROWS = 4096   # (4096, 128) f32 block = 2 MiB per input per buffer
NUM_CORES = 2          # leading "parallel" grid axis (v7x megacore); fine on 1-TC chips


def _sse_kernel(x_ref, y_ref, o_ref, acc_ref, *, valid_rows, tile_rows,
                steps_per_core, need_mask):
    """Accumulate sum((x - y)^2) into a per-core (8, 128) vector accumulator."""
    c = pl.program_id(0)   # "parallel" core-split axis
    i = pl.program_id(1)   # "arbitrary" reduction axis

    @pl.when(i == 0)
    def _init():
        acc_ref[...] = jnp.zeros_like(acc_ref)

    d = x_ref[...].astype(jnp.float32) - y_ref[...].astype(jnp.float32)
    sq = d * d

    if need_mask:  # static (trace-time) decision; only emitted for ragged grids
        row0 = (c * steps_per_core + i) * tile_rows
        row_ids = row0 + lax.broadcasted_iota(jnp.int32, (tile_rows, LANES), 0)
        sq = jnp.where(row_ids < valid_rows, sq, 0.0)

    # Pure-VPU accumulation: fold sublane-groups of the tile onto an (8, 128)
    # accumulator; the cross-lane/sublane reduce is deferred to plain JAX.
    acc_ref[...] += jnp.sum(sq.reshape(tile_rows // SUBLANES, SUBLANES, LANES), axis=0)

    @pl.when(i == pl.num_programs(1) - 1)
    def _finalize():
        o_ref[...] = acc_ref[...]   # single lane-dense (8,128) store per core


def _sum_squared_error_2d(x2d: jax.Array, y2d: jax.Array) -> jax.Array:
    """Pallas reduction of sum((x - y)^2) over a (rows, 128) view; rows % 8 == 0."""
    rows = x2d.shape[0]
    tile_rows = min(MAX_TILE_ROWS, rows)           # multiple of 8 by construction
    nblocks = pl.cdiv(rows, tile_rows)
    steps_per_core = pl.cdiv(nblocks, NUM_CORES)
    # Masking only needed if the (core, step) grid over-covers the row range.
    need_mask = (NUM_CORES * steps_per_core * tile_rows) != rows

    def in_map(c, i):
        b = c * steps_per_core + i
        # Clamp over-coverage blocks to a valid block; their contribution is
        # zeroed by the in-kernel row mask.
        return (jnp.minimum(b, nblocks - 1), 0)

    kern = functools.partial(
        _sse_kernel,
        valid_rows=rows,
        tile_rows=tile_rows,
        steps_per_core=steps_per_core,
        need_mask=need_mask,
    )

    partials = pl.pallas_call(
        kern,
        out_shape=jax.ShapeDtypeStruct((NUM_CORES, SUBLANES, LANES), jnp.float32),
        grid_spec=pltpu.PrefetchScalarGridSpec(
            num_scalar_prefetch=0,
            grid=(NUM_CORES, steps_per_core),
            in_specs=[
                pl.BlockSpec((tile_rows, LANES), in_map),
                pl.BlockSpec((tile_rows, LANES), in_map),
            ],
            out_specs=pl.BlockSpec((None, SUBLANES, LANES), lambda c, i: (c, 0, 0)),
            scratch_shapes=[pltpu.VMEM((SUBLANES, LANES), jnp.float32)],
        ),
        compiler_params=pltpu.CompilerParams(
            dimension_semantics=("parallel", "arbitrary"),
            vmem_limit_bytes=32 * 1024 * 1024,
        ),
    )(x2d, y2d)

    # Final cross-lane/sublane reduce of the tiny (2, 8, 128) partials in JAX.
    return jnp.sum(partials)


@functools.partial(jax.jit, static_argnames=("max_val",))
def psnr_loss(inp: jax.Array, target: jax.Array, max_val: float) -> jax.Array:
    if inp.shape != target.shape:
        raise TypeError(
            f"Expected tensors of equal shapes, but got {inp.shape} and {target.shape}"
        )
    n = inp.size
    # Native dtype end-to-end into VMEM (cast happens inside the kernel).
    x_flat = inp.reshape(-1)
    y_flat = target.reshape(-1)

    # Main part: largest multiple-of-1024 prefix -> (rows, 128) view (free
    # bitcast when it covers the whole buffer; no whole-array pad/copy).
    main_rows = (n // (LANES * SUBLANES)) * SUBLANES
    main_elems = main_rows * LANES

    sse = jnp.float32(0.0)
    if main_elems > 0:
        if main_elems == n:
            x2d = x_flat.reshape(main_rows, LANES)
            y2d = y_flat.reshape(main_rows, LANES)
        else:
            x2d = x_flat[:main_elems].reshape(main_rows, LANES)
            y2d = y_flat[:main_elems].reshape(main_rows, LANES)
        sse = sse + _sum_squared_error_2d(x2d, y2d)

    if main_elems != n:
        # Ragged tail (< 1024 elements): trivial in plain JAX; avoids padding /
        # copying the full buffers.
        xt = x_flat[main_elems:].astype(jnp.float32)
        yt = y_flat[main_elems:].astype(jnp.float32)
        dt = xt - yt
        sse = sse + jnp.sum(dt * dt)

    mse_val = sse / jnp.float32(n)
    max_val_f = jnp.float32(max_val)
    # Note: mse == 0 -> +inf, matching kornia's reference behavior.
    return 10.0 * jnp.log10(max_val_f * max_val_f / mse_val)


class PSNRLoss:
    """JAX/Pallas port of kornia.losses.PSNRLoss (forward only)."""

    def __init__(self, max_val: float) -> None:
        self.max_val = float(max_val)

    def __call__(self, inp: jax.Array, target: jax.Array) -> jax.Array:
        return psnr_loss(inp, target, self.max_val)


if __name__ == "__main__":
    key = jax.random.PRNGKey(0)
    k1, k2 = jax.random.split(key)

    # Example inputs: NCHW-shaped images (batch=2, channels=4, 16x16 spatial).
    x = jax.random.uniform(k1, (2, 4, 16, 16), dtype=jnp.float32)
    t = x + 0.05 * jax.random.normal(k2, (2, 4, 16, 16), dtype=jnp.float32)

    loss_mod = PSNRLoss(max_val=1.0)
    out = loss_mod(x, t)
    out = jax.block_until_ready(out)

    mse_ref = jnp.mean((x - t) ** 2)
    ref = 10.0 * jnp.log10(1.0 / mse_ref)
    assert out.shape == ()
    assert jnp.allclose(out, ref, rtol=1e-5, atol=1e-5), (out, ref)

    # Ragged-shape check (exercises the masked last block + JAX tail path).
    k3, k4 = jax.random.split(k2)
    xr = jax.random.uniform(k3, (3, 3, 17, 19), dtype=jnp.float32)
    tr = xr + 0.05 * jax.random.normal(k4, (3, 3, 17, 19), dtype=jnp.float32)
    out_r = jax.block_until_ready(PSNRLoss(max_val=2.0)(xr, tr))
    mse_r = jnp.mean((xr - tr) ** 2)
    ref_r = 10.0 * jnp.log10(4.0 / mse_r)
    assert jnp.allclose(out_r, ref_r, rtol=1e-5, atol=1e-5), (out_r, ref_r)

    print("KERNEL_OK")
</pallas_src>

<mosaic_0001>
module attributes {stable_mosaic.version = 11 : i64} {
  func.func @_sse_kernel(%arg0: i32, %arg1: i32, %arg2: memref<16x128xf32, #tpu.memory_space<vmem>>, %arg3: memref<16x128xf32, #tpu.memory_space<vmem>>, %arg4: memref<1x8x128xf32, #tpu.memory_space<vmem>>, %arg5: memref<8x128xf32, #tpu.memory_space<vmem>>) attributes {dimension_semantics = [#tpu.dimension_semantics<parallel>, #tpu.dimension_semantics<arbitrary>], iteration_bounds = array<i64: 2, 1>, scalar_prefetch = 0 : i64, scratch_operands = 1 : i64, tpu.core_type = #tpu.core_type<tc>, window_params = [{transform_indices = @transform_0, window_bounds = array<i64: 16, 128>}, {transform_indices = @transform_1, window_bounds = array<i64: 16, 128>}, {transform_indices = @transform_2, window_bounds = array<i64: 1, 8, 128>}]} {
    %c0_i32 = arith.constant 0 : i32
    %0 = arith.cmpi eq, %arg1, %c0_i32 : i32
    %1 = arith.extui %0 : i1 to i32
    %c0_i32_0 = arith.constant 0 : i32
    %2 = arith.cmpi ne, %1, %c0_i32_0 : i32
    scf.if %2 {
      %cst_12 = arith.constant 0.000000e+00 : f32
      %25 = vector.broadcast %cst_12 : f32 to vector<8x128xf32>
      %c0_13 = arith.constant 0 : index
      %c0_14 = arith.constant 0 : index
      %26 = vector.load %arg5[%c0_13, %c0_14] : memref<8x128xf32, #tpu.memory_space<vmem>>, vector<8x128xf32>
      tpu.vector_store %arg5[%c0_13, %c0_14], %25 {strides = array<i32>} : memref<8x128xf32, #tpu.memory_space<vmem>>, vector<8x128xf32>,
    } else {
    }
    %c0 = arith.constant 0 : index
    %c0_1 = arith.constant 0 : index
    %3 = vector.load %arg2[%c0, %c0_1] : memref<16x128xf32, #tpu.memory_space<vmem>>, vector<16x128xf32>
    %c0_2 = arith.constant 0 : index
    %c0_3 = arith.constant 0 : index
    %4 = vector.load %arg3[%c0_2, %c0_3] : memref<16x128xf32, #tpu.memory_space<vmem>>, vector<16x128xf32>
    %5 = arith.subf %3, %4 : vector<16x128xf32>
    %6 = arith.mulf %5, %5 : vector<16x128xf32>
    %c1_i32 = arith.constant 1 : i32
    %7 = arith.muli %arg0, %c1_i32 : i32
    %8 = arith.addi %7, %arg1 : i32
    %c16_i32 = arith.constant 16 : i32
    %9 = arith.muli %8, %c16_i32 : i32
    %10 = tpu.iota {dimensions = array<i32: 0>} : vector<16x128xi32>
    %11 = vector.broadcast %9 : i32 to vector<16x128xi32>
    %12 = arith.addi %11, %10 : vector<16x128xi32>
    %c16_i32_4 = arith.constant 16 : i32
    %13 = vector.broadcast %c16_i32_4 : i32 to vector<16x128xi32>
    %14 = arith.cmpi slt, %12, %13 : vector<16x128xi32>
    %cst = arith.constant 0.000000e+00 : f32
    %15 = vector.broadcast %cst : f32 to vector<16x128xf32>
    %16 = arith.select %14, %6, %15 : vector<16x128xi1>, vector<16x128xf32>
    %c0_5 = arith.constant 0 : index
    %c0_6 = arith.constant 0 : index
    %17 = vector.load %arg5[%c0_5, %c0_6] : memref<8x128xf32, #tpu.memory_space<vmem>>, vector<8x128xf32>
    %18 = vector.shape_cast %16 : vector<16x128xf32> to vector<2x8x128xf32>
    %cst_7 = arith.constant dense<0.000000e+00> : vector<8x128xf32>
    %19 = vector.multi_reduction <add>, %18, %cst_7 [0] : vector<2x8x128xf32> to vector<8x128xf32>
    %20 = arith.addf %17, %19 : vector<8x128xf32>
    %c0_8 = arith.constant 0 : index
    %c0_9 = arith.constant 0 : index
    %21 = vector.load %arg5[%c0_8, %c0_9] : memref<8x128xf32, #tpu.memory_space<vmem>>, vector<8x128xf32>
    tpu.vector_store %arg5[%c0_8, %c0_9], %20 {strides = array<i32>} : memref<8x128xf32, #tpu.memory_space<vmem>>, vector<8x128xf32>,
    %c0_i32_10 = arith.constant 0 : i32
    %22 = arith.cmpi eq, %arg1, %c0_i32_10 : i32
    %23 = arith.extui %22 : i1 to i32
    %c0_i32_11 = arith.constant 0 : i32
    %24 = arith.cmpi ne, %23, %c0_i32_11 : i32
    scf.if %24 {
      %c0_12 = arith.constant 0 : index
      %c0_13 = arith.constant 0 : index
      %25 = vector.load %arg5[%c0_12, %c0_13] : memref<8x128xf32, #tpu.memory_space<vmem>>, vector<8x128xf32>
      %c0_14 = arith.constant 0 : index
      %c0_15 = arith.constant 0 : index
      %c0_16 = arith.constant 0 : index
      %26 = vector.load %arg4[%c0_14, %c0_15, %c0_16] : memref<1x8x128xf32, #tpu.memory_space<vmem>>, vector<1x8x128xf32>
      %27 = vector.shape_cast %26 : vector<1x8x128xf32> to vector<8x128xf32>
      %28 = vector.shape_cast %25 : vector<8x128xf32> to vector<1x8x128xf32>
      tpu.vector_store %arg4[%c0_14, %c0_15, %c0_16], %28 {strides = array<i32>} : memref<1x8x128xf32, #tpu.memory_space<vmem>>, vector<1x8x128xf32>,
    } else {
    }
    return
  }
  func.func @transform_0(%arg0: i32, %arg1: i32) -> (i32, i32) {
    %c1_i32 = arith.constant 1 : i32
    %0 = arith.muli %arg0, %c1_i32 : i32
    %1 = arith.addi %0, %arg1 : i32
    %c0_i32 = arith.constant 0 : i32
    %2 = arith.minsi %1, %c0_i32 : i32
    %c0_i32_0 = arith.constant 0 : i32
    %c0_i32_1 = arith.constant 0 : i32
    return %2, %c0_i32_0 : i32, i32
  }
  func.func @transform_1(%arg0: i32, %arg1: i32) -> (i32, i32) {
    %c1_i32 = arith.constant 1 : i32
    %0 = arith.muli %arg0, %c1_i32 : i32
    %1 = arith.addi %0, %arg1 : i32
    %c0_i32 = arith.constant 0 : i32
    %2 = arith.minsi %1, %c0_i32 : i32
    %c0_i32_0 = arith.constant 0 : i32
    %c0_i32_1 = arith.constant 0 : i32
    return %2, %c0_i32_0 : i32, i32
  }
  func.func @transform_2(%arg0: i32, %arg1: i32) -> (i32, i32, i32) {
    %c0_i32 = arith.constant 0 : i32
    %c0_i32_0 = arith.constant 0 : i32
    %c0_i32_1 = arith.constant 0 : i32
    return %arg0, %c0_i32, %c0_i32_0 : i32, i32, i32
  }
}

</mosaic_0001>

<bundles_post_ra>
// kernel: psnr_loss.1
= control target key start
LH: loop header
LB: loop body
LE: loop exit
PB: predicated region body
PF: predicated region fallthrough
CT: control target
= control target key end

     0   :  { %s403_s9 = smov 0   ;;  %s405_s10 = smov 0   ;;  %s439_s0 = inlined_call_operand.vmem [shape: f32[16,128], index: 0, kind: input, shape index: {}]   ;;  %s440_s1 = inlined_call_operand.vmem [shape: f32[16,128], index: 1, kind: input, shape index: {}]   ;;  %s441_s2 = inlined_call_operand.vmem [shape: f32[2,8,128], index: 2, kind: output, shape index: {}]  }
   0x1   :  { %s407_s11 = smov 0  }
   0x2 LB: > { %s24_s12 = sadd.s32 1, %s382_s10  ;;  %p331_p0 = scmp.ge.s32.totalorder %s386_s11, 1  ;;  %s386_s11 = sphi %s407_s11, %s12_s11   ;;  %s382_s10 = sphi %s405_s10, %s443_s10   ;;  %s378_s9 = sphi %s403_s9, %s442_s9  }
   0x3   : > { %p26_p1 = scmp.ge.s32.totalorder %s24_s12, 2  ;;  %p160_p2 = scmp.lt.s32.totalorder %s386_s11, 3 }
   0x5   : > { %s445_s12 = smov (%p26_p1, %s24_s12), 0  ;;  %p161_p3 = pnand %p331_p0, %p160_p2 }
   0x6   : > { %p193_p4 = scmp.lt.s32.totalorder (!%p161_p3), %s378_s9, 0  ;;  %v235_v0 = vlaneseq (!%p161_p3)  ;;  %s337_s14 = sshll.u32 (!%p161_p3), %s378_s9, 4 }
   0x7   : > { %164 = sbr.rel (%p161_p3) target bundleno = 32 (0x20), region = 28  ;;  %p216_p5 = scmp.lt.s32.totalorder (!%p161_p3), %s378_s9, 1  ;;  %v238_v3 = vstv (!%p161_p3), %s337_s14 }
   0x8   : > { %v236_v1 = vshrl.u32 (!%p161_p3), %v235_v0, 7 }
   0xa   : > { %v237_v2 = vadd.s32 (!%p161_p3), 8, %v236_v1  ;;  %v239_v4 = vadd.s32 (!%p161_p3), %v238_v3, %v236_v1 }
   0xc   : > { %v240_v5 = vadd.s32 (!%p161_p3), %v238_v3, %v237_v2  ;;  %vm241_vm0 = vcmp.lt.s32.totalorder (!%p161_p3), %v239_v4, 16 }
   0xe   : > { %s194_s13 = scalar_select %p193_p4, %s378_s9, 0  ;;  %vm242_vm1 = vcmp.lt.s32.totalorder %v240_v5, 16 }
   0xf   : > { %s449_s9 = smov (!%p216_p5, %s378_s9), 1 }
  0x10   : > { %s332_s15 = sshll.u32 %s194_s13, 1  ;;  %s336_s23 = sshll.u32 %s449_s9, 3 }
  0x11   : > { %p196_p6 = scmp.lt.s32.totalorder %s332_s15, 1  ;;  %s219_s26 = scalar_lea.vmem %s441_s2, %s336_s23 }
  0x13   : > { %s447_s15 = smov (!%p196_p6, %s332_s15), 1 }
  0x14   : > { %s333_s16 = sshll.u32 %s447_s15, 3 }
  0x15   : > { %s199_s19 = scalar_lea.vmem %s439_s0, %s333_s16  ;;  %s211_s22 = scalar_lea.vmem %s440_s1, %s333_s16 }
  0x16   : > { %v225_v6 = vld [vmem:[%s199_s19] sm:$0xff]  ;;  %v226_v7 = vld [vmem:[%s199_s19 + $0x8] sm:$0xff] }
  0x17   : > { %v227_v8 = vld [vmem:[%s211_s22] sm:$0xff]  ;;  %v228_v9 = vld [vmem:[%s211_s22 + $0x8] sm:$0xff] }
  0x18   : > { %v229_v10 = vsub.f32 %v225_v6, %v227_v8  ;;  %v230_v11 = vsub.f32 %v226_v7, %v228_v9 }
  0x1a   : > { %v231_v12 = vmul.f32 %v229_v10, %v229_v10  ;;  %v232_v13 = vmul.f32 %v230_v11, %v230_v11 }
  0x1c   : > { %v243_v14 = vsel %vm241_vm0, %v231_v12, 0.0  ;;  %v244_v15 = vsel %vm242_vm1, %v232_v13, 0.0 }
  0x1d   : > { %v246_v16 = vadd.f32 %v244_v15, %v243_v14 }
  0x1f   : > { %253 = vst [vmem:[%s219_s26] sm:$0xff] %v246_v16 }
  0x20 PF: > { %s12_s11 = sadd.s32 1, %s386_s11   ;;  %s442_s9 = smov %s382_s10 }
  0x21   : > { %p9_p7 = scmp.ge.s32.totalorder %s12_s11, 4   ;;  %s443_s10 = smov %s445_s12 }
  0x23   :  { %11 = sbr.rel (!%p9_p7) target bundleno = 2 (0x2), region = 69 }

</bundles_post_ra>
